<compile_context>
chip_gen: v7x
topology: tpu7x:2x2x1
jax: 0.10.0
libtpu: 0.0.40
codegen_flags: <defaults>
</compile_context>

<pallas_src>
import functools

import jax
import jax.numpy as jnp
from jax import lax
from jax.experimental import pallas as pl
from jax.experimental.pallas import tpu as pltpu


def _round_up(x, m):
    return ((x + m - 1) // m) * m


def _pad2d(a, rows, cols):
    return jnp.pad(a, ((0, rows - a.shape[0]), (0, cols - a.shape[1])))


# ---------------------------------------------------------------------------
# Kernel 1: GRU recurrence.   grid = (num_batch_tiles,)
# ---------------------------------------------------------------------------
def gru_recurrence_kernel(
    maxlen_ref,  # SMEM [nbi] int32 (scalar prefetch: per-tile max valid len)
    x_ref,       # [L, Bt, Ep]  compute_dtype : emb + w(msg) + time-encode
    len_ref,     # [Bt, 1] int32 valid sequence length (>=1 for real rows)
    wi_ref,      # [Ep, 3Hp]  fused input weights  (r|z|n)
    bi_ref,      # [1, 3Hp]   fused input-side biases (b_ir+b_hr|b_iz+b_hz|b_in)
    wh_ref,      # [Hp, 3Hp]  fused hidden weights (r|z|n)
    bhn_ref,     # [1, Hp]    b_hn (stays inside the r*(...) term)
    last_ref,    # out: [Bt, Hp] f32   h at t = len-1
    gx_scr,      # VMEM [L, Bt, 3Hp] compute_dtype : precomputed input gates
    h_scr,       # VMEM [Bt, Hp] f32 : running hidden state
):
    L, Bt, Ep = x_ref.shape
    Hp = wh_ref.shape[0]

    # ---- Phase 1: input projection for ALL timesteps in one MXU matmul.
    # Stored in compute_dtype (bf16 on the fast path) to halve scratch size.
    x_all = x_ref[...].reshape(L * Bt, Ep)
    gx_scr[...] = (
        jnp.dot(x_all, wi_ref[...], preferred_element_type=jnp.float32)
        + bi_ref[...]).reshape(L, Bt, 3 * Hp).astype(gx_scr.dtype)

    # ---- Phase 2: serial recurrence bounded by this tile's max valid length.
    wh = wh_ref[...]
    bhn_b = jnp.broadcast_to(bhn_ref[...], (Bt, Hp))   # hoisted (no per-iter bcast)
    len_vec = len_ref[...]                             # [Bt, 1] int32

    h_scr[...] = jnp.zeros((Bt, Hp), jnp.float32)
    last_ref[...] = jnp.zeros((Bt, Hp), last_ref.dtype)

    max_t = maxlen_ref[pl.program_id(0)]               # dynamic loop bound

    @pl.loop(0, max_t)
    def _(t):
        h = h_scr[...]
        g = gx_scr[t].astype(jnp.float32)                          # [Bt, 3Hp]
        gh = jnp.dot(h.astype(wh.dtype), wh,
                     preferred_element_type=jnp.float32)           # [Bt, 3Hp]
        r = jax.nn.sigmoid(g[:, :Hp] + gh[:, :Hp])
        z = jax.nn.sigmoid(g[:, Hp:2 * Hp] + gh[:, Hp:2 * Hp])
        n = jnp.tanh(g[:, 2 * Hp:] + r * (gh[:, 2 * Hp:] + bhn_b))
        h_new = (1.0 - z) * n + z * h
        h_scr[...] = h_new
        # keep h at t == len-1  (== pack_padded_sequence + last-step gather)
        last_ref[...] = jnp.where(len_vec == (t + 1), h_new, last_ref[...])


# ---------------------------------------------------------------------------
# Kernel 2: final FC.   grid = (num_item_tiles,)   (W_fc streamed exactly once)
# ---------------------------------------------------------------------------
def fc_kernel(h_ref, wfc_ref, bfc_ref, out_ref):
    out_ref[...] = (
        jnp.dot(h_ref[...], wfc_ref[...], preferred_element_type=jnp.float32)
        + bfc_ref[...]).astype(out_ref.dtype)


# ---------------------------------------------------------------------------
# Wrapper: plain-JAX glue + two pallas_calls
# ---------------------------------------------------------------------------
def gru4rec_forward(label_srcs, state, params, *, offset, history_length,
                    compute_dtype=jnp.bfloat16, max_batch_tile=256,
                    max_item_tile=2048, vmem_budget_bytes=48 << 20):
    src_history, src_dst_history, src_history_timestamp = state
    rows = label_srcs - offset

    msg_hist = src_history[rows].astype(jnp.float32)               # [B, L, M]
    dst_hist = src_dst_history[rows]                                # [B, L]
    ts_hist = src_history_timestamp[rows].astype(jnp.float32)       # [B, L]

    B = label_srcs.shape[0]
    L = history_length
    E = params["wemb"].shape[1]
    H = params["whr"].shape[0]
    num_items = params["wfc"].shape[1]

    valid = jnp.maximum(
        jnp.sum((msg_hist[:, :, 0] > 0).astype(jnp.int32), axis=-1), 1)  # [B]

    # Embedding gather + cheap elementwise prep stays in XLA (not tile-friendly).
    # TODO(synk): dropout is identity here (inference); training dropout omitted.
    emb = jnp.take(params["wemb"], dst_hist.reshape(-1), axis=0).reshape(B, L, E)
    x = (emb
         + jnp.einsum("blm,me->ble", msg_hist, params["ww"]) + params["bw"]
         + jnp.cos(ts_hist[..., None] * params["tw"] + params["tb"]))  # [B,L,E]

    # ---- TPU-friendly padding / budget-driven tile sizes --------------------
    Ep = _round_up(E, 128)
    Hp = _round_up(H, 128)
    cb = jnp.dtype(compute_dtype).itemsize
    out_dtype = compute_dtype
    ob = jnp.dtype(out_dtype).itemsize

    fixed_w = 2 * (Ep + Hp) * 3 * Hp * cb + 2 * 4 * Hp * 4   # weights + biases (x2 buf)

    def rec_cost(b):
        return (2 * L * b * Ep * cb          # x block (double buffered)
                + L * b * 3 * Hp * cb        # gx scratch
                + 3 * b * Hp * 4             # last_h out (x2) + h scratch
                + 2 * b * 4                  # lens
                + fixed_w)

    bt = min(max_batch_tile, _round_up(B, 16))
    while bt > 16 and rec_cost(bt) > vmem_budget_bytes:
        bt -= 16
    Bp = _round_up(B, bt)
    nbi = Bp // bt

    def fc_cost(t):
        return (2 * Hp * t * cb + 2 * t * 4       # wfc / bfc tiles (x2 buf)
                + 2 * Bp * t * ob                 # output block (x2 buf)
                + 2 * Bp * Hp * cb)               # resident last_h

    tn = min(max_item_tile, _round_up(num_items, 128))
    while tn > 128 and fc_cost(tn) > vmem_budget_bytes:
        tn -= 128
    Np = _round_up(num_items, tn)
    nbj = Np // tn

    rec_limit = int(max(32 << 20, min(128 << 20, rec_cost(bt) * 1.4 + (4 << 20))))
    fc_limit = int(max(32 << 20, min(128 << 20, fc_cost(tn) * 1.4 + (4 << 20))))

    # ---- padded / fused operands --------------------------------------------
    x_seq = jnp.transpose(x, (1, 0, 2))                            # [L, B, E]
    x_seq = jnp.pad(x_seq, ((0, 0), (0, Bp - B), (0, Ep - E))).astype(compute_dtype)
    lens = jnp.pad(valid.astype(jnp.int32), (0, Bp - B))           # [Bp]
    maxlen = jnp.max(lens.reshape(nbi, bt), axis=1).astype(jnp.int32)  # [nbi]
    lens2d = lens.reshape(Bp, 1)

    # Fused + zero-padded weights.  Padded hidden dims stay exactly zero
    # through the recurrence (zero weights/biases -> n_pad = 0, h0 = 0).
    wi = jnp.concatenate([_pad2d(params["wir"], Ep, Hp),
                          _pad2d(params["wiz"], Ep, Hp),
                          _pad2d(params["win"], Ep, Hp)], axis=1).astype(compute_dtype)
    wh = jnp.concatenate([_pad2d(params["whr"], Hp, Hp),
                          _pad2d(params["whz"], Hp, Hp),
                          _pad2d(params["whn"], Hp, Hp)], axis=1).astype(compute_dtype)
    bi = jnp.concatenate([_pad2d(params["br"], 1, Hp),
                          _pad2d(params["bz"], 1, Hp),
                          _pad2d(params["bin"], 1, Hp)], axis=1).astype(jnp.float32)
    bhn = _pad2d(params["bhn"], 1, Hp).astype(jnp.float32)
    wfc = _pad2d(params["wfc"], Hp, Np).astype(compute_dtype)
    bfc = _pad2d(params["bfc"], 1, Np).astype(jnp.float32)

    # ---- call 1: GRU recurrence ---------------------------------------------
    last_h = pl.pallas_call(
        gru_recurrence_kernel,
        out_shape=jax.ShapeDtypeStruct((Bp, Hp), jnp.float32),
        grid_spec=pltpu.PrefetchScalarGridSpec(
            num_scalar_prefetch=1,
            grid=(nbi,),
            in_specs=[
                pl.BlockSpec((L, bt, Ep), lambda i, ml: (0, i, 0)),   # x_seq
                pl.BlockSpec((bt, 1), lambda i, ml: (i, 0)),          # lens
                pl.BlockSpec((Ep, 3 * Hp), lambda i, ml: (0, 0)),     # W_i
                pl.BlockSpec((1, 3 * Hp), lambda i, ml: (0, 0)),      # b_i
                pl.BlockSpec((Hp, 3 * Hp), lambda i, ml: (0, 0)),     # W_h
                pl.BlockSpec((1, Hp), lambda i, ml: (0, 0)),          # b_hn
            ],
            out_specs=pl.BlockSpec((bt, Hp), lambda i, ml: (i, 0)),
            scratch_shapes=[
                pltpu.VMEM((L, bt, 3 * Hp), compute_dtype),   # gates_x
                pltpu.VMEM((bt, Hp), jnp.float32),            # running h
            ]),
        compiler_params=pltpu.CompilerParams(
            dimension_semantics=("parallel",),
            vmem_limit_bytes=rec_limit),
    )(maxlen, x_seq, lens2d, wi, bi, wh, bhn)

    # ---- call 2: final FC (item axis parallel; W_fc streamed exactly once) --
    out = pl.pallas_call(
        fc_kernel,
        out_shape=jax.ShapeDtypeStruct((Bp, Np), out_dtype),
        grid_spec=pltpu.PrefetchScalarGridSpec(
            num_scalar_prefetch=0,
            grid=(nbj,),
            in_specs=[
                pl.BlockSpec((Bp, Hp), lambda j: (0, 0)),      # last_h (resident)
                pl.BlockSpec((Hp, tn), lambda j: (0, j)),      # W_fc tile
                pl.BlockSpec((1, tn), lambda j: (0, j)),       # b_fc tile
            ],
            out_specs=pl.BlockSpec((Bp, tn), lambda j: (0, j))),
        compiler_params=pltpu.CompilerParams(
            dimension_semantics=("parallel",),
            vmem_limit_bytes=fc_limit),
    )(last_h.astype(compute_dtype), wfc, bfc)

    return out[:B, :num_items]


# ---------------------------------------------------------------------------
# Pure-JAX reference mirroring the PyTorch forward (eval mode)
# ---------------------------------------------------------------------------
def reference_forward(label_srcs, state, params, *, offset, history_length):
    src_history, src_dst_history, src_history_timestamp = state
    rows = label_srcs - offset
    msg_hist = src_history[rows]
    dst_hist = src_dst_history[rows]
    ts_hist = src_history_timestamp[rows].astype(jnp.float32)

    valid = jnp.maximum(
        jnp.sum((msg_hist[:, :, 0] > 0).astype(jnp.int32), axis=-1), 1)

    B = label_srcs.shape[0]
    L = history_length
    emb = jnp.take(params["wemb"], dst_hist.reshape(-1), axis=0).reshape(B, L, -1)
    x = (emb
         + jnp.einsum("blm,me->ble", msg_hist, params["ww"]) + params["bw"]
         + jnp.cos(ts_hist[..., None] * params["tw"] + params["tb"]))

    def step(h, x_t):
        r = jax.nn.sigmoid(x_t @ params["wir"] + h @ params["whr"] + params["br"])
        z = jax.nn.sigmoid(x_t @ params["wiz"] + h @ params["whz"] + params["bz"])
        n = jnp.tanh(x_t @ params["win"] + params["bin"]
                     + r * (h @ params["whn"] + params["bhn"]))
        h_new = (1.0 - z) * n + z * h
        return h_new, h_new

    H = params["whr"].shape[0]
    h0 = jnp.zeros((B, H), jnp.float32)
    _, hs = lax.scan(step, h0, jnp.transpose(x, (1, 0, 2)))        # [L, B, H]
    last = hs[valid - 1, jnp.arange(B)]                            # [B, H]
    return last @ params["wfc"] + params["bfc"]


if __name__ == "__main__":
    # Small config consistent with the module's __init__
    B = 4            # batch of label_srcs
    L = 8            # history_length
    E = 32           # embedding_size
    H = 32           # hidden_size
    num_items = 64
    num_nodes = 64
    msg_len = 1      # datasets_name != 'tgbn-reddit'
    offset = 0       # datasets_name == 'tgbn-trade'

    key = jax.random.PRNGKey(0)
    ks = jax.random.split(key, 20)

    params = {
        "wemb": 0.1 * jax.random.normal(ks[0], (num_items, E), jnp.float32),
        "ww":   0.2 * jax.random.normal(ks[1], (msg_len, E), jnp.float32),
        "bw":   0.1 * jax.random.normal(ks[2], (1, E), jnp.float32),
        # TimeEncode fixed parameters (as in TGB reset_parameters)
        "tw":   (1.0 / (10.0 ** jnp.linspace(0.0, 9.0, E))).reshape(1, E).astype(jnp.float32),
        "tb":   jnp.zeros((1, E), jnp.float32),
        "wir":  0.2 * jax.random.normal(ks[3], (E, H), jnp.float32),
        "wiz":  0.2 * jax.random.normal(ks[4], (E, H), jnp.float32),
        "win":  0.2 * jax.random.normal(ks[5], (E, H), jnp.float32),
        "whr":  0.2 * jax.random.normal(ks[6], (H, H), jnp.float32),
        "whz":  0.2 * jax.random.normal(ks[7], (H, H), jnp.float32),
        "whn":  0.2 * jax.random.normal(ks[8], (H, H), jnp.float32),
        "br":   0.1 * jax.random.normal(ks[9], (1, H), jnp.float32),   # b_ir + b_hr
        "bz":   0.1 * jax.random.normal(ks[10], (1, H), jnp.float32),  # b_iz + b_hz
        "bin":  0.1 * jax.random.normal(ks[11], (1, H), jnp.float32),
        "bhn":  0.1 * jax.random.normal(ks[12], (1, H), jnp.float32),
        "wfc":  0.2 * jax.random.normal(ks[13], (H, num_items), jnp.float32),
        "bfc":  0.1 * jax.random.normal(ks[14], (1, num_items), jnp.float32),
    }

    # Deterministic synthetic module state (what update_batch would have built):
    # each node has a valid prefix of length k (positive msg / ts / dst), zeros after.
    valid_len = jax.random.randint(ks[15], (num_nodes,), 0, L + 1)            # [N]
    pos = jnp.arange(L)[None, :]                                              # [1, L]
    prefix_mask = (pos < valid_len[:, None]).astype(jnp.float32)              # [N, L]
    msg_vals = 0.5 + jax.random.uniform(ks[16], (num_nodes, L, msg_len))      # > 0
    src_history = msg_vals * prefix_mask[..., None]                           # [N, L, M]
    src_dst_history = (jax.random.randint(ks[17], (num_nodes, L), 1, num_items)
                       * prefix_mask.astype(jnp.int32))                       # [N, L]
    src_history_timestamp = (jax.random.randint(ks[18], (num_nodes, L), 1, 1000)
                             * prefix_mask.astype(jnp.int32))                 # [N, L]
    state = (src_history, src_dst_history, src_history_timestamp)

    label_srcs = jax.random.randint(ks[19], (B,), 0, num_nodes)

    ref = reference_forward(label_srcs, state, params,
                            offset=offset, history_length=L)

    # ---- f32 compute path: exactness check ---------------------------------
    fwd_f32 = jax.jit(functools.partial(
        gru4rec_forward, offset=offset, history_length=L,
        compute_dtype=jnp.float32))
    out_f32 = jax.block_until_ready(fwd_f32(label_srcs, state, params))
    assert out_f32.shape == (B, num_items), out_f32.shape
    err_f32 = float(jnp.max(jnp.abs(out_f32 - ref)))
    assert err_f32 < 5e-4, f"f32 max abs err {err_f32}"

    # ---- bf16 compute path (v5e/v6e/v7x fast path): looser tolerance -------
    fwd_bf16 = jax.jit(functools.partial(
        gru4rec_forward, offset=offset, history_length=L,
        compute_dtype=jnp.bfloat16))
    out_bf16 = jax.block_until_ready(fwd_bf16(label_srcs, state, params))
    assert out_bf16.shape == (B, num_items), out_bf16.shape
    err_bf16 = float(jnp.max(jnp.abs(out_bf16.astype(jnp.float32) - ref)))
    assert err_bf16 < 0.2, f"bf16 max abs err {err_bf16}"

    print("KERNEL_OK")
</pallas_src>

<mosaic_0001>
module attributes {stable_mosaic.version = 11 : i64} {
  func.func @gru_recurrence_kernel(%arg0: i32, %arg1: memref<1xi32, #tpu.memory_space<smem>>, %arg2: memref<8x16x128xf32, #tpu.memory_space<vmem>>, %arg3: memref<16x1xi32, #tpu.memory_space<vmem>>, %arg4: memref<128x384xf32, #tpu.memory_space<vmem>>, %arg5: memref<1x384xf32, #tpu.memory_space<vmem>>, %arg6: memref<128x384xf32, #tpu.memory_space<vmem>>, %arg7: memref<1x128xf32, #tpu.memory_space<vmem>>, %arg8: memref<16x128xf32, #tpu.memory_space<vmem>>, %arg9: memref<8x16x384xf32, #tpu.memory_space<vmem>>, %arg10: memref<16x128xf32, #tpu.memory_space<vmem>>) attributes {dimension_semantics = [#tpu.dimension_semantics<parallel>], iteration_bounds = array<i64: 1>, scalar_prefetch = 1 : i64, scratch_operands = 2 : i64, tpu.core_type = #tpu.core_type<tc>, window_params = [{transform_indices = @transform_0, window_bounds = array<i64: 8, 16, 128>}, {transform_indices = @transform_1, window_bounds = array<i64: 16, 1>}, {pipeline_mode = #tpu.pipeline_mode<synchronous>, transform_indices = @transform_2, window_bounds = array<i64: 128, 384>}, {pipeline_mode = #tpu.pipeline_mode<synchronous>, transform_indices = @transform_3, window_bounds = array<i64: 1, 384>}, {pipeline_mode = #tpu.pipeline_mode<synchronous>, transform_indices = @transform_4, window_bounds = array<i64: 128, 384>}, {pipeline_mode = #tpu.pipeline_mode<synchronous>, transform_indices = @transform_5, window_bounds = array<i64: 1, 128>}, {transform_indices = @transform_6, window_bounds = array<i64: 16, 128>}]} {
    %c0 = arith.constant 0 : index
    %c0_0 = arith.constant 0 : index
    %c0_1 = arith.constant 0 : index
    %0 = vector.load %arg2[%c0, %c0_0, %c0_1] : memref<8x16x128xf32, #tpu.memory_space<vmem>>, vector<8x16x128xf32>
    %1 = vector.shape_cast %0 : vector<8x16x128xf32> to vector<128x128xf32>
    %c0_2 = arith.constant 0 : index
    %c0_3 = arith.constant 0 : index
    %2 = vector.load %arg4[%c0_2, %c0_3] : memref<128x384xf32, #tpu.memory_space<vmem>>, vector<128x384xf32>
    %cst = arith.constant dense<0.000000e+00> : vector<128x384xf32>
    %3 = tpu.matmul %1, %2, %cst {dimension_numbers = #tpu.dot_dimension_numbers<[1], [0], [0], [1], [0, 0, 1, 1], [], []>} : vector<128x128xf32>, vector<128x384xf32>, vector<128x384xf32> -> vector<128x384xf32>
    %c0_4 = arith.constant 0 : index
    %c0_5 = arith.constant 0 : index
    %4 = vector.load %arg5[%c0_4, %c0_5] : memref<1x384xf32, #tpu.memory_space<vmem>>, vector<1x384xf32>
    %5 = vector.broadcast %4 : vector<1x384xf32> to vector<128x384xf32>
    %6 = arith.addf %3, %5 : vector<128x384xf32>
    %7 = vector.shape_cast %6 : vector<128x384xf32> to vector<8x16x384xf32>
    %c0_6 = arith.constant 0 : index
    %c0_7 = arith.constant 0 : index
    %c0_8 = arith.constant 0 : index
    %8 = vector.load %arg9[%c0_6, %c0_7, %c0_8] : memref<8x16x384xf32, #tpu.memory_space<vmem>>, vector<8x16x384xf32>
    tpu.vector_store %arg9[%c0_6, %c0_7, %c0_8], %7 {strides = array<i32>} : memref<8x16x384xf32, #tpu.memory_space<vmem>>, vector<8x16x384xf32>,
    %c0_9 = arith.constant 0 : index
    %c0_10 = arith.constant 0 : index
    %9 = vector.load %arg6[%c0_9, %c0_10] : memref<128x384xf32, #tpu.memory_space<vmem>>, vector<128x384xf32>
    %c0_11 = arith.constant 0 : index
    %c0_12 = arith.constant 0 : index
    %10 = vector.load %arg7[%c0_11, %c0_12] : memref<1x128xf32, #tpu.memory_space<vmem>>, vector<1x128xf32>
    %11 = vector.shape_cast %10 : vector<1x128xf32> to vector<1x128xf32>
    %12 = vector.broadcast %11 : vector<1x128xf32> to vector<16x128xf32>
    %c0_13 = arith.constant 0 : index
    %c0_14 = arith.constant 0 : index
    %13 = vector.load %arg3[%c0_13, %c0_14] : memref<16x1xi32, #tpu.memory_space<vmem>>, vector<16x1xi32>
    %cst_15 = arith.constant 0.000000e+00 : f32
    %14 = vector.broadcast %cst_15 : f32 to vector<16x128xf32>
    %c0_16 = arith.constant 0 : index
    %c0_17 = arith.constant 0 : index
    %15 = vector.load %arg10[%c0_16, %c0_17] : memref<16x128xf32, #tpu.memory_space<vmem>>, vector<16x128xf32>
    tpu.vector_store %arg10[%c0_16, %c0_17], %14 {strides = array<i32>} : memref<16x128xf32, #tpu.memory_space<vmem>>, vector<16x128xf32>,
    %cst_18 = arith.constant 0.000000e+00 : f32
    %16 = vector.broadcast %cst_18 : f32 to vector<16x128xf32>
    %c0_19 = arith.constant 0 : index
    %c0_20 = arith.constant 0 : index
    %17 = vector.load %arg8[%c0_19, %c0_20] : memref<16x128xf32, #tpu.memory_space<vmem>>, vector<16x128xf32>
    tpu.vector_store %arg8[%c0_19, %c0_20], %16 {strides = array<i32>} : memref<16x128xf32, #tpu.memory_space<vmem>>, vector<16x128xf32>,
    %18 = arith.index_cast %arg0 : i32 to index
    %19 = memref.load %arg1[%18] : memref<1xi32, #tpu.memory_space<smem>>
    %c0_i32 = arith.constant 0 : i32
    %20 = arith.subi %19, %c0_i32 : i32
    %c1_i32 = arith.constant 1 : i32
    %c1_i32_21 = arith.constant 1 : i32
    %21 = arith.subi %c1_i32, %c1_i32_21 : i32
    %22 = arith.addi %20, %21 : i32
    %c1_i32_22 = arith.constant 1 : i32
    %23 = arith.divsi %22, %c1_i32_22 : i32
    %c1_i32_23 = arith.constant 1 : i32
    %c0_i32_24 = arith.constant 0 : i32
    %c0_i32_25 = arith.constant 0 : i32
    %24 = arith.subi %23, %c0_i32_25 : i32
    %25 = arith.addi %c0_i32_25, %24 : i32
    %c1_i32_26 = arith.constant 1 : i32
    scf.for %arg11 = %c0_i32_25 to %25 step %c1_i32_26  : i32 {
      %26 = arith.muli %arg11, %c1_i32_23 : i32
      %27 = arith.addi %c0_i32_24, %26 : i32
      %c0_27 = arith.constant 0 : index
      %c0_28 = arith.constant 0 : index
      %28 = vector.load %arg10[%c0_27, %c0_28] : memref<16x128xf32, #tpu.memory_space<vmem>>, vector<16x128xf32>
      %29 = arith.index_cast %27 : i32 to index
      %c0_29 = arith.constant 0 : index
      %c0_30 = arith.constant 0 : index
      %30 = vector.load %arg9[%29, %c0_29, %c0_30] : memref<8x16x384xf32, #tpu.memory_space<vmem>>, vector<1x16x384xf32>
      %31 = vector.shape_cast %30 : vector<1x16x384xf32> to vector<16x384xf32>
      %cst_31 = arith.constant dense<0.000000e+00> : vector<16x384xf32>
      %32 = tpu.matmul %28, %9, %cst_31 {dimension_numbers = #tpu.dot_dimension_numbers<[1], [0], [0], [1], [0, 0, 1, 1], [], []>} : vector<16x128xf32>, vector<128x384xf32>, vector<16x384xf32> -> vector<16x384xf32>
      %33 = vector.extract_strided_slice %31 {offsets = [0, 0], sizes = [16, 128], strides = [1, 1]} : vector<16x384xf32> to vector<16x128xf32>
      %34 = vector.extract_strided_slice %32 {offsets = [0, 0], sizes = [16, 128], strides = [1, 1]} : vector<16x384xf32> to vector<16x128xf32>
      %35 = arith.addf %33, %34 : vector<16x128xf32>
      %36 = arith.negf %35 : vector<16x128xf32>
      %37 = math.exp %36 : vector<16x128xf32>
      %cst_32 = arith.constant 1.000000e+00 : f32
      %38 = vector.broadcast %cst_32 : f32 to vector<16x128xf32>
      %39 = arith.addf %38, %37 : vector<16x128xf32>
      %40 = arith.divf %38, %39 : vector<16x128xf32>
      %41 = vector.extract_strided_slice %31 {offsets = [0, 128], sizes = [16, 128], strides = [1, 1]} : vector<16x384xf32> to vector<16x128xf32>
      %42 = vector.extract_strided_slice %32 {offsets = [0, 128], sizes = [16, 128], strides = [1, 1]} : vector<16x384xf32> to vector<16x128xf32>
      %43 = arith.addf %41, %42 : vector<16x128xf32>
      %44 = arith.negf %43 : vector<16x128xf32>
      %45 = math.exp %44 : vector<16x128xf32>
      %cst_33 = arith.constant 1.000000e+00 : f32
      %46 = vector.broadcast %cst_33 : f32 to vector<16x128xf32>
      %47 = arith.addf %46, %45 : vector<16x128xf32>
      %48 = arith.divf %46, %47 : vector<16x128xf32>
      %49 = vector.extract_strided_slice %31 {offsets = [0, 256], sizes = [16, 128], strides = [1, 1]} : vector<16x384xf32> to vector<16x128xf32>
      %50 = vector.extract_strided_slice %32 {offsets = [0, 256], sizes = [16, 128], strides = [1, 1]} : vector<16x384xf32> to vector<16x128xf32>
      %51 = arith.addf %50, %12 : vector<16x128xf32>
      %52 = arith.mulf %40, %51 : vector<16x128xf32>
      %53 = arith.addf %49, %52 : vector<16x128xf32>
      %54 = math.tanh %53 : vector<16x128xf32>
      %cst_34 = arith.constant 1.000000e+00 : f32
      %55 = vector.broadcast %cst_34 : f32 to vector<16x128xf32>
      %56 = arith.subf %55, %48 : vector<16x128xf32>
      %57 = arith.mulf %56, %54 : vector<16x128xf32>
      %58 = arith.mulf %48, %28 : vector<16x128xf32>
      %59 = arith.addf %57, %58 : vector<16x128xf32>
      %c0_35 = arith.constant 0 : index
      %c0_36 = arith.constant 0 : index
      %60 = vector.load %arg10[%c0_35, %c0_36] : memref<16x128xf32, #tpu.memory_space<vmem>>, vector<16x128xf32>
      tpu.vector_store %arg10[%c0_35, %c0_36], %59 {strides = array<i32>} : memref<16x128xf32, #tpu.memory_space<vmem>>, vector<16x128xf32>,
      %c1_i32_37 = arith.constant 1 : i32
      %61 = arith.addi %27, %c1_i32_37 : i32
      %62 = vector.broadcast %61 : i32 to vector<16x1xi32>
      %63 = arith.cmpi eq, %13, %62 : vector<16x1xi32>
      %c0_38 = arith.constant 0 : index
      %c0_39 = arith.constant 0 : index
      %64 = vector.load %arg8[%c0_38, %c0_39] : memref<16x128xf32, #tpu.memory_space<vmem>>, vector<16x128xf32>
      %65 = vector.shape_cast %63 : vector<16x1xi1> to vector<16x1xi1>
      %66 = vector.broadcast %65 : vector<16x1xi1> to vector<16x128xi1>
      %67 = arith.select %66, %59, %64 : vector<16x128xi1>, vector<16x128xf32>
      %c0_40 = arith.constant 0 : index
      %c0_41 = arith.constant 0 : index
      %68 = vector.load %arg8[%c0_40, %c0_41] : memref<16x128xf32, #tpu.memory_space<vmem>>, vector<16x128xf32>
      tpu.vector_store %arg8[%c0_40, %c0_41], %67 {strides = array<i32>} : memref<16x128xf32, #tpu.memory_space<vmem>>, vector<16x128xf32>,
    }
    return
  }
  func.func @transform_0(%arg0: i32, %arg1: memref<1xi32, #tpu.memory_space<smem>>) -> (i32, i32, i32) {
    %c0_i32 = arith.constant 0 : i32
    %c0_i32_0 = arith.constant 0 : i32
    %c0_i32_1 = arith.constant 0 : i32
    return %c0_i32, %arg0, %c0_i32_0 : i32, i32, i32
  }
  func.func @transform_1(%arg0: i32, %arg1: memref<1xi32, #tpu.memory_space<smem>>) -> (i32, i32) {
    %c0_i32 = arith.constant 0 : i32
    %c0_i32_0 = arith.constant 0 : i32
    return %arg0, %c0_i32 : i32, i32
  }
  func.func @transform_2(%arg0: i32, %arg1: memref<1xi32, #tpu.memory_space<smem>>) -> (i32, i32) {
    %c0_i32 = arith.constant 0 : i32
    %c0_i32_0 = arith.constant 0 : i32
    %c0_i32_1 = arith.constant 0 : i32
    return %c0_i32, %c0_i32_0 : i32, i32
  }
  func.func @transform_3(%arg0: i32, %arg1: memref<1xi32, #tpu.memory_space<smem>>) -> (i32, i32) {
    %c0_i32 = arith.constant 0 : i32
    %c0_i32_0 = arith.constant 0 : i32
    %c0_i32_1 = arith.constant 0 : i32
    return %c0_i32, %c0_i32_0 : i32, i32
  }
  func.func @transform_4(%arg0: i32, %arg1: memref<1xi32, #tpu.memory_space<smem>>) -> (i32, i32) {
    %c0_i32 = arith.constant 0 : i32
    %c0_i32_0 = arith.constant 0 : i32
    %c0_i32_1 = arith.constant 0 : i32
    return %c0_i32, %c0_i32_0 : i32, i32
  }
  func.func @transform_5(%arg0: i32, %arg1: memref<1xi32, #tpu.memory_space<smem>>) -> (i32, i32) {
    %c0_i32 = arith.constant 0 : i32
    %c0_i32_0 = arith.constant 0 : i32
    %c0_i32_1 = arith.constant 0 : i32
    return %c0_i32, %c0_i32_0 : i32, i32
  }
  func.func @transform_6(%arg0: i32, %arg1: memref<1xi32, #tpu.memory_space<smem>>) -> (i32, i32) {
    %c0_i32 = arith.constant 0 : i32
    %c0_i32_0 = arith.constant 0 : i32
    return %arg0, %c0_i32 : i32, i32
  }
}

module attributes {stable_mosaic.version = 11 : i64} {
  func.func @fc_kernel(%arg0: i32, %arg1: memref<16x128xf32, #tpu.memory_space<vmem>>, %arg2: memref<128x128xf32, #tpu.memory_space<vmem>>, %arg3: memref<1x128xf32, #tpu.memory_space<vmem>>, %arg4: memref<16x128xf32, #tpu.memory_space<vmem>>) attributes {dimension_semantics = [#tpu.dimension_semantics<parallel>], iteration_bounds = array<i64: 1>, scalar_prefetch = 0 : i64, scratch_operands = 0 : i64, tpu.core_type = #tpu.core_type<tc>, window_params = [{pipeline_mode = #tpu.pipeline_mode<synchronous>, transform_indices = @transform_0, window_bounds = array<i64: 16, 128>}, {transform_indices = @transform_1, window_bounds = array<i64: 128, 128>}, {transform_indices = @transform_2, window_bounds = array<i64: 1, 128>}, {transform_indices = @transform_3, window_bounds = array<i64: 16, 128>}]} {
    %c0 = arith.constant 0 : index
    %c0_0 = arith.constant 0 : index
    %0 = vector.load %arg1[%c0, %c0_0] : memref<16x128xf32, #tpu.memory_space<vmem>>, vector<16x128xf32>
    %c0_1 = arith.constant 0 : index
    %c0_2 = arith.constant 0 : index
    %1 = vector.load %arg2[%c0_1, %c0_2] : memref<128x128xf32, #tpu.memory_space<vmem>>, vector<128x128xf32>
    %cst = arith.constant dense<0.000000e+00> : vector<16x128xf32>
    %2 = tpu.matmul %0, %1, %cst {dimension_numbers = #tpu.dot_dimension_numbers<[1], [0], [0], [1], [0, 0, 1, 1], [], []>} : vector<16x128xf32>, vector<128x128xf32>, vector<16x128xf32> -> vector<16x128xf32>
    %c0_3 = arith.constant 0 : index
    %c0_4 = arith.constant 0 : index
    %3 = vector.load %arg3[%c0_3, %c0_4] : memref<1x128xf32, #tpu.memory_space<vmem>>, vector<1x128xf32>
    %4 = vector.broadcast %3 : vector<1x128xf32> to vector<16x128xf32>
    %5 = arith.addf %2, %4 : vector<16x128xf32>
    %c0_5 = arith.constant 0 : index
    %c0_6 = arith.constant 0 : index
    %6 = vector.load %arg4[%c0_5, %c0_6] : memref<16x128xf32, #tpu.memory_space<vmem>>, vector<16x128xf32>
    tpu.vector_store %arg4[%c0_5, %c0_6], %5 {strides = array<i32>} : memref<16x128xf32, #tpu.memory_space<vmem>>, vector<16x128xf32>,
    return
  }
  func.func @transform_0(%arg0: i32) -> (i32, i32) {
    %c0_i32 = arith.constant 0 : i32
    %c0_i32_0 = arith.constant 0 : i32
    %c0_i32_1 = arith.constant 0 : i32
    return %c0_i32, %c0_i32_0 : i32, i32
  }
  func.func @transform_1(%arg0: i32) -> (i32, i32) {
    %c0_i32 = arith.constant 0 : i32
    %c0_i32_0 = arith.constant 0 : i32
    return %c0_i32, %arg0 : i32, i32
  }
  func.func @transform_2(%arg0: i32) -> (i32, i32) {
    %c0_i32 = arith.constant 0 : i32
    %c0_i32_0 = arith.constant 0 : i32
    return %c0_i32, %arg0 : i32, i32
  }
  func.func @transform_3(%arg0: i32) -> (i32, i32) {
    %c0_i32 = arith.constant 0 : i32
    %c0_i32_0 = arith.constant 0 : i32
    return %c0_i32, %arg0 : i32, i32
  }
}

</mosaic_0001>

<bundles_post_ra>
// kernel: gru4rec_forward.3
= control target key start
LH: loop header
LB: loop body
LE: loop exit
PB: predicated region body
PF: predicated region fallthrough
CT: control target
= control target key end

     0   :  { %s289_s1 = inlined_call_operand.vmem [shape: f32[128,128], index: 1, kind: input, shape index: {}]   ;;  %s290_s0 = inlined_call_operand.vmem [shape: f32[16,128], index: 0, kind: input, shape index: {}]   ;;  %s291_s2 = inlined_call_operand.vmem [shape: f32[1,128], index: 2, kind: input, shape index: {}]   ;;  %s292_s3 = inlined_call_operand.vmem [shape: f32[16,128], index: 3, kind: output, shape index: {}]  }
   0x1   :  { %v16_v0 = vld [vmem:[%s289_s1] sm:$0xff]  ;;  %v17_v1 = vld [vmem:[%s289_s1 + $0x8] sm:$0xff]  ;;  %v18_v2 = vld [vmem:[%s289_s1 + $0x10] sm:$0xff] }
   0x2   :  { %v174_v3 = vpack.c.bf16 %v17_v1, %v16_v0  ;;  %v19_v4 = vld [vmem:[%s289_s1 + $0x18] sm:$0xff]  ;;  %v20_v6 = vld [vmem:[%s289_s1 + $0x20] sm:$0xff]  ;;  %v21_v7 = vld [vmem:[%s289_s1 + $0x28] sm:$0xff] }
   0x3   :  { %v178_v5 = vpack.c.bf16 %v19_v4, %v18_v2  ;;  %v182_v8 = vpack.c.bf16 %v21_v7, %v20_v6  ;;  %v14_v9 = vld [vmem:[%s290_s0] sm:$0xff]  ;;  %v22_v10 = vld [vmem:[%s289_s1 + $0x30] sm:$0xff]  ;;  %v23_v11 = vld [vmem:[%s289_s1 + $0x38] sm:$0xff] }
   0x4   :  { %175 = vmatprep.subr.bf16.mxu0 %v174_v3  ;;  %171 = vmatprep.mubr.f32.mxu0 %v14_v9  ;;  %v186_v12 = vpack.c.bf16 %v23_v11, %v22_v10  ;;  %v24_v13 = vld [vmem:[%s289_s1 + $0x40] sm:$0xff]  ;;  %v25_v14 = vld [vmem:[%s289_s1 + $0x48] sm:$0xff]  ;;  %v26_v16 = vld [vmem:[%s289_s1 + $0x50] sm:$0xff] }
   0x5   :  { %177 = vmatpush3.bf16.msra.mxu0 %v174_v3  ;;  %v190_v15 = vpack.c.bf16 %v25_v14, %v24_v13  ;;  %v27_v17 = vld [vmem:[%s289_s1 + $0x58] sm:$0xff]  ;;  %v28_v19 = vld [vmem:[%s289_s1 + $0x60] sm:$0xff]  ;;  %v29_v20 = vld [vmem:[%s289_s1 + $0x68] sm:$0xff] }
   0x6   :  { %179 = vmatprep.subr.bf16.mxu0 %v178_v5  ;;  %v194_v18 = vpack.c.bf16 %v27_v17, %v26_v16  ;;  %v198_v21 = vpack.c.bf16 %v29_v20, %v28_v19  ;;  %v30_v22 = vld [vmem:[%s289_s1 + $0x70] sm:$0xff]  ;;  %v31_v23 = vld [vmem:[%s289_s1 + $0x78] sm:$0xff]  ;;  %v15_v25 = vld [vmem:[%s290_s0 + $0x8] sm:$0xff] }
   0x7   :  { %v202_v24 = vpack.c.bf16 %v31_v23, %v30_v22  ;;  %v120_v26 = vld [vmem:[%s291_s2] ss:$0 sm:$0xff] }
   0x9   :  { %181 = vmatpush3.bf16.msra.mxu0 %v178_v5 }
   0xa   :  { %183 = vmatprep.subr.bf16.mxu0 %v182_v8 }
   0xd   :  { %185 = vmatpush3.bf16.msra.mxu0 %v182_v8 }
   0xe   :  { %187 = vmatprep.subr.bf16.mxu0 %v186_v12 }
  0x11   :  { %189 = vmatpush3.bf16.msra.mxu0 %v186_v12 }
  0x12   :  { %191 = vmatprep.subr.bf16.mxu0 %v190_v15 }
  0x15   :  { %193 = vmatpush3.bf16.msra.mxu0 %v190_v15 }
  0x16   :  { %195 = vmatprep.subr.bf16.mxu0 %v194_v18 }
  0x19   :  { %197 = vmatpush3.bf16.msra.mxu0 %v194_v18 }
  0x1a   :  { %199 = vmatprep.subr.bf16.mxu0 %v198_v21 }
  0x1d   :  { %201 = vmatpush3.bf16.msra.mxu0 %v198_v21 }
  0x1e   :  { %203 = vmatprep.subr.bf16.mxu0 %v202_v24 }
  0x21   :  { %205 = vmatpush3.bf16.msra.mxu0 %v202_v24 }
  0x24   :  { %172 = vmatmul.mubr.f32.vlgmr.msra.gmra.mrb[0].mxu0 %v15_v25 }
  0xf7   :  { %v173_v27 = vpop.f32.mrb[0].mxu0 }
  0xf8   :  { %v111_v28 = vadd.f32 %v173_v27, %v120_v26  ;;  %v105_v29 = vpop.f32.mrb[1].mxu0 }
  0xf9   :  { %v106_v30 = vadd.f32 %v120_v26, %v105_v29 }
  0xfa   :  { %115 = vst [vmem:[%s292_s3 + $0x8] sm:$0xff] %v111_v28 }
  0xfb   :  { %114 = vst [vmem:[%s292_s3] sm:$0xff] %v106_v30 }

// kernel: gru4rec_forward.2
= control target key start
LH: loop header
LB: loop body
LE: loop exit
PB: predicated region body
PF: predicated region fallthrough
CT: control target
= control target key end

     0   :  { %v1085_v3 = vmov 0.0   ;;  %s1764_s0 = inlined_call_operand.<no memory space> [shape: s32[1], index: 0, kind: input, shape index: {}]   ;;  %s1765_s3 = inlined_call_operand.vmem [shape: f32[128,384], index: 3, kind: input, shape index: {}]   ;;  %s1766_s7 = inlined_call_operand.vmem [shape: f32[16,128], index: 7, kind: output, shape index: {}]   ;;  %s1767_s1 = inlined_call_operand.vmem [shape: f32[8,16,128], index: 1, kind: input, shape index: {}]   ;;  %s1768_s5 = inlined_call_operand.vmem [shape: f32[128,384], index: 5, kind: input, shape index: {}]   ;;  %s1769_s2 = inlined_call_operand.vmem [shape: s32[16,1], index: 2, kind: input, shape index: {}]   ;;  %s1770_s6 = inlined_call_operand.vmem [shape: f32[1,128], index: 6, kind: input, shape index: {}]   ;;  %s1771_s4 = inlined_call_operand.vmem [shape: f32[1,384], index: 4, kind: input, shape index: {}]  }
   0x1   :  { %v42_v0 = vld [vmem:[%s1765_s3 + $0x8] sm:$0xff]  ;;  %v45_v1 = vld [vmem:[%s1765_s3 + $0x20] sm:$0xff]  ;;  %170 = vmatprep.mubr.f32.mxu0 %v1085_v3  ;;  %517 = vst [vmem:[#allocation3] sm:$0xff] %v1085_v3  ;;  %518 = vst [vmem:[#allocation3 + $0x8] sm:$0xff] %v1085_v3  ;;  %p769_p0 = scmp.le.s32.totalorder %s1764_s0, 0 }
   0x2   :  { %v41_v2 = vld [vmem:[%s1765_s3] sm:$0xff]  ;;  %519 = vst [vmem:[%s1766_s7] sm:$0xff] %v1085_v3  ;;  %520 = vst [vmem:[%s1766_s7 + $0x8] sm:$0xff] %v1085_v3  ;;  %v917_v4 = vpack.c.bf16 %v45_v1, %v42_v0  ;;  %v44_v5 = vld [vmem:[%s1765_s3 + $0x18] sm:$0xff] }
   0x3   :  { %v48_v6 = vld [vmem:[%s1765_s3 + $0x38] sm:$0xff]  ;;  %v51_v7 = vld [vmem:[%s1765_s3 + $0x50] sm:$0xff]  ;;  %v919_v8 = vpack.c.bf16 %v44_v5, %v41_v2  ;;  %v50_v11 = vld [vmem:[%s1765_s3 + $0x48] sm:$0xff] }
   0x4   :  { %v921_v9 = vpack.c.bf16 %v51_v7, %v48_v6  ;;  %v47_v10 = vld [vmem:[%s1765_s3 + $0x30] sm:$0xff]  ;;  %v54_v12 = vld [vmem:[%s1765_s3 + $0x68] sm:$0xff]  ;;  %918 = vmatprep.subr.bf16.mxu0 %v917_v4  ;;  %v57_v13 = vld [vmem:[%s1765_s3 + $0x80] sm:$0xff] }
   0x5   :  { %920 = vmatpush1.bf16.msra.mxu0 %v919_v8  ;;  %v923_v14 = vpack.c.bf16 %v50_v11, %v47_v10  ;;  %v925_v15 = vpack.c.bf16 %v57_v13, %v54_v12  ;;  %v53_v16 = vld [vmem:[%s1765_s3 + $0x60] sm:$0xff]  ;;  %v56_v17 = vld [vmem:[%s1765_s3 + $0x78] sm:$0xff]  ;;  %v63_v19 = vld [vmem:[%s1765_s3 + $0xb0] sm:$0xff] }
   0x6   :  { %922 = vmatprep.subr.bf16.mxu0 %v921_v9  ;;  %v60_v18 = vld [vmem:[%s1765_s3 + $0x98] sm:$0xff]  ;;  %v927_v20 = vpack.c.bf16 %v56_v17, %v53_v16  ;;  %v59_v22 = vld [vmem:[%s1765_s3 + $0x90] sm:$0xff]  ;;  %v62_v23 = vld [vmem:[%s1765_s3 + $0xa8] sm:$0xff] }
   0x7   :  { %v929_v21 = vpack.c.bf16 %v63_v19, %v60_v18  ;;  %v66_v24 = vld [vmem:[%s1765_s3 + $0xc8] sm:$0xff]  ;;  %v69_v25 = vld [vmem:[%s1765_s3 + $0xe0] sm:$0xff]  ;;  %v43_v26 = vld [vmem:[%s1765_s3 + $0x10] sm:$0xff]  ;;  %v931_v30 = vpack.c.bf16 %v62_v23, %v59_v22 }
   0x8   :  { %v46_v27 = vld [vmem:[%s1765_s3 + $0x28] sm:$0xff]  ;;  %v1202_v28 = vld [vmem:[%s1767_s1] sm:$0xff]  ;;  %v52_v33 = vld [vmem:[%s1765_s3 + $0x58] sm:$0xff]  ;;  %v933_v34 = vpack.c.bf16 %v69_v25, %v66_v24 }
   0x9   :  { %924 = vmatpush1.bf16.msra.mxu0 %v923_v14  ;;  %v49_v29 = vld [vmem:[%s1765_s3 + $0x40] sm:$0xff]  ;;  %v949_v32 = vpack.c.bf16 %v46_v27, %v43_v26  ;;  %858 = vmatprep.mubr.f32.mxu1 %v1202_v28  ;;  %v68_v35 = vld [vmem:[%s1765_s3 + $0xd8] sm:$0xff]  ;;  %v55_v37 = vld [vmem:[%s1765_s3 + $0x70] sm:$0xff] }
   0xa   :  { %926 = vmatprep.subr.bf16.mxu0 %v925_v15  ;;  %v65_v31 = vld [vmem:[%s1765_s3 + $0xc0] sm:$0xff]  ;;  %v953_v36 = vpack.c.bf16 %v52_v33, %v49_v29  ;;  %v58_v38 = vld [vmem:[%s1765_s3 + $0x88] sm:$0xff]  ;;  %v72_v39 = vld [vmem:[%s1765_s3 + $0xf8] sm:$0xff] }
   0xb   :  { %v75_v40 = vld [vmem:[%s1765_s3 + $0x110] sm:$0xff]  ;;  %950 = vmatprep.subr.bf16.mxu1 %v949_v32  ;;  %v935_v41 = vpack.c.bf16 %v68_v35, %v65_v31  ;;  %v957_v43 = vpack.c.bf16 %v58_v38, %v55_v37  ;;  %v74_v45 = vld [vmem:[%s1765_s3 + $0x108] sm:$0xff]  ;;  %v61_v46 = vld [vmem:[%s1765_s3 + $0xa0] sm:$0xff] }
   0xc   :  { %952 = vmatpush3.bf16.msra.mxu1 %v949_v32  ;;  %v71_v42 = vld [vmem:[%s1765_s3 + $0xf0] sm:$0xff]  ;;  %v937_v44 = vpack.c.bf16 %v75_v40, %v72_v39  ;;  %v64_v47 = vld [vmem:[%s1765_s3 + $0xb8] sm:$0xff]  ;;  %v78_v48 = vld [vmem:[%s1765_s3 + $0x128] sm:$0xff] }
   0xd   :  { %928 = vmatpush1.bf16.msra.mxu0 %v927_v20  ;;  %954 = vmatprep.subr.bf16.mxu1 %v953_v36  ;;  %v81_v49 = vld [vmem:[%s1765_s3 + $0x140] sm:$0xff]  ;;  %v939_v50 = vpack.c.bf16 %v74_v45, %v71_v42  ;;  %v961_v52 = vpack.c.bf16 %v64_v47, %v61_v46  ;;  %v80_v54 = vld [vmem:[%s1765_s3 + $0x138] sm:$0xff]  ;;  %v67_v55 = vld [vmem:[%s1765_s3 + $0xd0] sm:$0xff] }
   0xe   :  { %930 = vmatprep.subr.bf16.mxu0 %v929_v21  ;;  %v77_v51 = vld [vmem:[%s1765_s3 + $0x120] sm:$0xff]  ;;  %v941_v53 = vpack.c.bf16 %v81_v49, %v78_v48  ;;  %v70_v56 = vld [vmem:[%s1765_s3 + $0xe8] sm:$0xff]  ;;  %v84_v57 = vld [vmem:[%s1765_s3 + $0x158] sm:$0xff] }
   0xf   :  { %v87_v58 = vld [vmem:[%s1765_s3 + $0x170] sm:$0xff]  ;;  %v943_v59 = vpack.c.bf16 %v80_v54, %v77_v51  ;;  %v965_v61 = vpack.c.bf16 %v70_v56, %v67_v55  ;;  %v86_v63 = vld [vmem:[%s1765_s3 + $0x168] sm:$0xff]  ;;  %v73_v0 = vld [vmem:[%s1765_s3 + $0x100] sm:$0xff] }
  0x10   :  { %956 = vmatpush3.bf16.msra.mxu1 %v953_v36  ;;  %v83_v60 = vld [vmem:[%s1765_s3 + $0x150] sm:$0xff]  ;;  %v945_v62 = vpack.c.bf16 %v87_v58, %v84_v57  ;;  %v76_v1 = vld [vmem:[%s1765_s3 + $0x118] sm:$0xff]  ;;  %v82_v6 = vld [vmem:[%s1765_s3 + $0x148] sm:$0xff] }
  0x11   :  { %932 = vmatpush1.bf16.msra.mxu0 %v931_v30  ;;  %958 = vmatprep.subr.bf16.mxu1 %v957_v43  ;;  %v947_v2 = vpack.c.bf16 %v86_v63, %v83_v60  ;;  %v969_v4 = vpack.c.bf16 %v76_v1, %v73_v0  ;;  %v79_v5 = vld [vmem:[%s1765_s3 + $0x130] sm:$0xff]  ;;  %v85_v8 = vld [vmem:[%s1765_s3 + $0x160] sm:$0xff]  ;;  %v88_v9 = vld [vmem:[%s1765_s3 + $0x178] sm:$0xff] }
  0x12   :  { %934 = vmatprep.subr.bf16.mxu0 %v933_v34  ;;  %v973_v7 = vpack.c.bf16 %v82_v6, %v79_v5  ;;  %v26_v10 = vld [vmem:[%s1767_s1 + $0x8] sm:$0xff]  ;;  %v977_v11 = vpack.c.bf16 %v88_v9, %v85_v8  ;;  %v27_v12 = vld [vmem:[%s1767_s1 + $0x10] sm:$0xff]  ;;  %v28_v13 = vld [vmem:[%s1767_s1 + $0x18] sm:$0xff] }
  0x13   :  { %v29_v14 = vld [vmem:[%s1767_s1 + $0x20] sm:$0xff]  ;;  %v30_v15 = vld [vmem:[%s1767_s1 + $0x28] sm:$0xff]  ;;  %v31_v16 = vld [vmem:[%s1767_s1 + $0x30] sm:$0xff] }
  0x14   :  { %960 = vmatpush3.bf16.msra.mxu1 %v957_v43  ;;  %v32_v17 = vld [vmem:[%s1767_s1 + $0x38] sm:$0xff]  ;;  %v33_v18 = vld [vmem:[%s1767_s1 + $0x40] sm:$0xff]  ;;  %v34_v19 = vld [vmem:[%s1767_s1 + $0x48] sm:$0xff] }
  0x15   :  { %936 = vmatpush1.bf16.msra.mxu0 %v935_v41  ;;  %962 = vmatprep.subr.bf16.mxu1 %v961_v52  ;;  %v35_v20 = vld [vmem:[%s1767_s1 + $0x50] sm:$0xff]  ;;  %v36_v21 = vld [vmem:[%s1767_s1 + $0x58] sm:$0xff]  ;;  %v37_v22 = vld [vmem:[%s1767_s1 + $0x60] sm:$0xff] }
  0x16   :  { %938 = vmatprep.subr.bf16.mxu0 %v937_v44  ;;  %v38_v23 = vld [vmem:[%s1767_s1 + $0x68] sm:$0xff]  ;;  %v39_v24 = vld [vmem:[%s1767_s1 + $0x70] sm:$0xff]  ;;  %v40_v25 = vld [vmem:[%s1767_s1 + $0x78] sm:$0xff] }
  0x17   :  { %v1353_v26 = vld [vmem:[%s1768_s5] sm:$0xff]  ;;  %v1358_v27 = vld [vmem:[%s1768_s5 + $0x8] sm:$0xff]  ;;  %v1383_v31 = vld [vmem:[%s1768_s5 + $0x30] sm:$0xff] }
  0x18   :  { %964 = vmatpush3.bf16.msra.mxu1 %v961_v52  ;;  %v1373_v29 = vld [vmem:[%s1768_s5 + $0x20] sm:$0xff]  ;;  %v1378_v30 = vld [vmem:[%s1768_s5 + $0x28] sm:$0xff]  ;;  %v1388_v32 = vld [vmem:[%s1768_s5 + $0x38] sm:$0xff] }
  0x19   :  { %940 = vmatpush1.bf16.msra.mxu0 %v939_v50  ;;  %966 = vmatprep.subr.bf16.mxu1 %v965_v61  ;;  %v1393_v33 = vld [vmem:[%s1768_s5 + $0x40] sm:$0xff]  ;;  %v1398_v34 = vld [vmem:[%s1768_s5 + $0x48] sm:$0xff]  ;;  %v1403_v35 = vld [vmem:[%s1768_s5 + $0x50] sm:$0xff] }
  0x1a   :  { %942 = vmatprep.subr.bf16.mxu0 %v941_v53  ;;  %v1408_v36 = vld [vmem:[%s1768_s5 + $0x58] sm:$0xff]  ;;  %v1413_v37 = vld [vmem:[%s1768_s5 + $0x60] sm:$0xff]  ;;  %v1418_v38 = vld [vmem:[%s1768_s5 + $0x68] sm:$0xff] }
  0x1b   :  { %v1423_v39 = vld [vmem:[%s1768_s5 + $0x70] sm:$0xff]  ;;  %v1428_v40 = vld [vmem:[%s1768_s5 + $0x78] sm:$0xff]  ;;  %v1433_v41 = vld [vmem:[%s1768_s5 + $0x80] sm:$0xff] }
  0x1c   :  { %968 = vmatpush3.bf16.msra.mxu1 %v965_v61  ;;  %v1438_v42 = vld [vmem:[%s1768_s5 + $0x88] sm:$0xff]  ;;  %v1443_v43 = vld [vmem:[%s1768_s5 + $0x90] sm:$0xff]  ;;  %v1448_v44 = vld [vmem:[%s1768_s5 + $0x98] sm:$0xff] }
  0x1d   :  { %944 = vmatpush1.bf16.msra.mxu0 %v943_v59  ;;  %970 = vmatprep.subr.bf16.mxu1 %v969_v4  ;;  %v1453_v45 = vld [vmem:[%s1768_s5 + $0xa0] sm:$0xff]  ;;  %v1458_v46 = vld [vmem:[%s1768_s5 + $0xa8] sm:$0xff]  ;;  %v1463_v47 = vld [vmem:[%s1768_s5 + $0xb0] sm:$0xff] }
  0x1e   :  { %946 = vmatprep.subr.bf16.mxu0 %v945_v62  ;;  %v1468_v48 = vld [vmem:[%s1768_s5 + $0xb8] sm:$0xff]  ;;  %v1473_v49 = vld [vmem:[%s1768_s5 + $0xc0] sm:$0xff]  ;;  %v1478_v50 = vld [vmem:[%s1768_s5 + $0xc8] sm:$0xff] }
  0x1f   :  { %v1483_v51 = vld [vmem:[%s1768_s5 + $0xd0] sm:$0xff]  ;;  %v1488_v52 = vld [vmem:[%s1768_s5 + $0xd8] sm:$0xff]  ;;  %v1493_v53 = vld [vmem:[%s1768_s5 + $0xe0] sm:$0xff] }
  0x20   :  { %972 = vmatpush3.bf16.msra.mxu1 %v969_v4  ;;  %v1498_v54 = vld [vmem:[%s1768_s5 + $0xe8] sm:$0xff]  ;;  %v1503_v55 = vld [vmem:[%s1768_s5 + $0xf0] sm:$0xff]  ;;  %v1508_v56 = vld [vmem:[%s1768_s5 + $0xf8] sm:$0xff] }
  0x21   :  { %948 = vmatpush1.bf16.msra.mxu0 %v947_v2  ;;  %974 = vmatprep.subr.bf16.mxu1 %v973_v7  ;;  %v1513_v57 = vld [vmem:[%s1768_s5 + $0x100] sm:$0xff]  ;;  %v1518_v58 = vld [vmem:[%s1768_s5 + $0x108] sm:$0xff]  ;;  %v1523_v59 = vld [vmem:[%s1768_s5 + $0x110] sm:$0xff] }
  0x22   :  { %v1528_v60 = vld [vmem:[%s1768_s5 + $0x118] sm:$0xff]  ;;  %v1533_v61 = vld [vmem:[%s1768_s5 + $0x120] sm:$0xff]  ;;  %v1538_v62 = vld [vmem:[%s1768_s5 + $0x128] sm:$0xff] }
  0x23   :  { %v1543_v63 = vld [vmem:[%s1768_s5 + $0x130] sm:$0xff]  ;;  %v1548_v0 = vld [vmem:[%s1768_s5 + $0x138] sm:$0xff]  ;;  %v1553_v1 = vld [vmem:[%s1768_s5 + $0x140] sm:$0xff] }
  0x24   :  { %171 = vmatmul.mubr.f32.vlgmr.msra.gmra.mrb[0].mxu0 %v1202_v28  ;;  %976 = vmatpush3.bf16.msra.mxu1 %v973_v7  ;;  %v1363_v28 = vld [vmem:[%s1768_s5 + $0x10] sm:$0xff]  ;;  %1774 = vst [vmem:[#allocation7_spill] sm:$0xff] %v1548_v0  ;;  %1775 = vst [vmem:[#allocation8_spill] sm:$0xff] %v1553_v1  ;;  %v1558_v2 = vld [vmem:[%s1768_s5 + $0x148] sm:$0xff] }
  0x25   :  { %176 = vmatprep.mubr.f32.mxu0 %v1085_v3  ;;  %978 = vmatprep.subr.bf16.mxu1 %v977_v11  ;;  %1776 = vst [vmem:[#allocation9_spill] sm:$0xff] %v1558_v2  ;;  %v1563_v4 = vld [vmem:[%s1768_s5 + $0x150] sm:$0xff]  ;;  %v1568_v5 = vld [vmem:[%s1768_s5 + $0x158] sm:$0xff]  ;;  %v1573_v6 = vld [vmem:[%s1768_s5 + $0x160] sm:$0xff] }
  0x26   :  { %1777 = vst [vmem:[#allocation10_spill] sm:$0xff] %v1563_v4  ;;  %1778 = vst [vmem:[#allocation11_spill] sm:$0xff] %v1568_v5  ;;  %v1578_v7 = vld [vmem:[%s1768_s5 + $0x168] sm:$0xff]  ;;  %v1583_v8 = vld [vmem:[%s1768_s5 + $0x170] sm:$0xff] }
  0x27   :  { %1779 = vst [vmem:[#allocation12_spill] sm:$0xff] %v1573_v6  ;;  %1780 = vst [vmem:[#allocation13_spill] sm:$0xff] %v1578_v7  ;;  %v1588_v9 = vld [vmem:[%s1768_s5 + $0x178] sm:$0xff] }
  0x28   :  { %177 = vmatmul.mubr.f32.gmra.mrb[2].mxu0 %v26_v10  ;;  %980 = vmatpush3.bf16.msra.mxu1 %v977_v11  ;;  %1781 = vst [vmem:[#allocation14_spill] sm:$0xff] %v1588_v9  ;;  %v1598_v11 = vld [vmem:[%s1769_s2] sm:$0xff] }
  0x29   :  { %182 = vmatprep.mubr.f32.mxu0 %v1085_v3 }
  0x2b   :  { %859 = vmatmul.mubr.f32.vlgmr.msra.gmra.mrb[0].mxu1 %v26_v10  ;;  %v1593_v10 = vld [vmem:[%s1770_s6] ss:$0 sm:$0xff]  ;;  %s1665_s6 = smov (!%p769_p0), 0  }
  0x2c   :  { %183 = vmatmul.mubr.f32.gmra.mrb[4].mxu0 %v27_v12  ;;  %861 = vmatprep.mubr.f32.mxu1 %v27_v12  ;;  %1782 = vst [vmem:[#allocation15_spill] sm:$0xff] %v1593_v10  ;;  %v1603_v12 = vld [vmem:[%s1769_s2 + $0x8] sm:$0xff] }
  0x2d   :  { %188 = vmatprep.mubr.f32.mxu0 %v1085_v3 }
  0x2f   :  { %862 = vmatmul.mubr.f32.gmra.mrb[2].mxu1 %v28_v13 }
  0x30   :  { %189 = vmatmul.mubr.f32.gmra.mrb[6].mxu0 %v28_v13  ;;  %864 = vmatprep.mubr.f32.mxu1 %v29_v14  ;;  %v91_v13 = vlaneseq }
  0x31   :  { %194 = vmatprep.mubr.f32.mxu0 %v1085_v3 }
  0x33   :  { %865 = vmatmul.mubr.f32.gmra.mrb[4].mxu1 %v30_v15 }
  0x34   :  { %195 = vmatmul.mubr.f32.gmra.mrb[8].mxu0 %v29_v14  ;;  %867 = vmatprep.mubr.f32.mxu1 %v31_v16  ;;  %v92_v14 = vshrl.u32 %v91_v13, 7 }
  0x35   :  { %200 = vmatprep.mubr.f32.mxu0 %v1085_v3 }
  0x37   :  { %868 = vmatmul.mubr.f32.gmra.mrb[6].mxu1 %v32_v17 }
  0x38   :  { %201 = vmatmul.mubr.f32.gmra.mrb[10].mxu0 %v30_v15  ;;  %870 = vmatprep.mubr.f32.mxu1 %v33_v18  ;;  %v93_v15 = vsub.s32 0, %v92_v14 }
  0x39   :  { %206 = vmatprep.mubr.f32.mxu0 %v1085_v3 }
  0x3b   :  { %871 = vmatmul.mubr.f32.gmra.mrb[8].mxu1 %v34_v19 }
  0x3c   :  { %207 = vmatmul.mubr.f32.gmra.mrb[12].mxu0 %v31_v16  ;;  %873 = vmatprep.mubr.f32.mxu1 %v35_v20  ;;  %v89_v16 = vld [vmem:[%s1771_s4] sm:$0x7] }
  0x3d   :  { %212 = vmatprep.mubr.f32.mxu0 %v1085_v3 }
  0x3f   :  { %874 = vmatmul.mubr.f32.gmra.mrb[10].mxu1 %v36_v21 }
  0x40   :  { %213 = vmatmul.mubr.f32.gmra.mrb[14].mxu0 %v32_v17  ;;  %876 = vmatprep.mubr.f32.mxu1 %v37_v22  ;;  %v97_v17 = vsub.s32 1, %v92_v14 }
  0x41   :  { %218 = vmatprep.mubr.f32.mxu0 %v1085_v3 }
  0x43   :  { %877 = vmatmul.mubr.f32.gmra.mrb[12].mxu1 %v38_v23 }
  0x44   :  { %219 = vmatmul.mubr.f32.gmra.mrb[16].mxu0 %v33_v18  ;;  %879 = vmatprep.mubr.f32.mxu1 %v39_v24  ;;  %v1608_v18 = vrot.slane %v89_v16, %v93_v15 }
  0x45   :  { %224 = vmatprep.mubr.f32.mxu0 %v1085_v3 }
  0x47   :  { %880 = vmatmul.mubr.f32.gmra.mrb[14].mxu1 %v40_v25 }
  0x48   :  { %225 = vmatmul.mubr.f32.gmra.mrb[18].mxu0 %v34_v19  ;;  %v1610_v19 = vrot.slane %v89_v16, %v97_v17 }
  0x49   :  { %230 = vmatprep.mubr.f32.mxu0 %v1085_v3 }
  0x4c   :  { %231 = vmatmul.mubr.f32.gmra.mrb[20].mxu0 %v35_v20 }
  0x4d   :  { %236 = vmatprep.mubr.f32.mxu0 %v1085_v3 }
  0x50   :  { %237 = vmatmul.mubr.f32.gmra.mrb[22].mxu0 %v36_v21 }
  0x51   :  { %242 = vmatprep.mubr.f32.mxu0 %v1085_v3 }
  0x54   :  { %243 = vmatmul.mubr.f32.gmra.mrb[24].mxu0 %v37_v22 }
  0x55   :  { %248 = vmatprep.mubr.f32.mxu0 %v1085_v3 }
  0x58   :  { %249 = vmatmul.mubr.f32.gmra.mrb[26].mxu0 %v38_v23 }
  0x59   :  { %254 = vmatprep.mubr.f32.mxu0 %v1085_v3 }
  0x5c   :  { %255 = vmatmul.mubr.f32.gmra.mrb[28].mxu0 %v39_v24 }
  0x5d   :  { %260 = vmatprep.mubr.f32.mxu0 %v1085_v3  ;;  %v1368_v3 = vld [vmem:[%s1768_s5 + $0x18] sm:$0xff] }
  0x5e   :  { %1773 = vst [vmem:[#allocation6_spill] sm:$0xff] %v1368_v3 }
  0x60   :  { %261 = vmatmul.mubr.f32.gmra.mrb[30].mxu0 %v40_v25  ;;  %v101_v25 = vsub.s32 2, %v92_v14 }
  0x62   :  { %v1616_v17 = vrot.slane %v89_v16, %v101_v25 }
  0xf7   :  { %v172_v20 = vpop.f32.mrb[0].mxu0 }
  0xf8   :  { %v173_v21 = vadd.f32 %v172_v20, %v1608_v18  ;;  %v174_v22 = vpop.f32.mrb[1].mxu0 }
  0xf9   :  { %v175_v23 = vadd.f32 %v174_v22, %v1610_v19 }
  0xfa   :  { %412 = vst [vmem:[#allocation2] sm:$0xff] %v173_v21 }
  0xfb   :  { %413 = vst [vmem:[#allocation2 + $0x8] sm:$0xff] %v175_v23  ;;  %v178_v24 = vpop.f32.mrb[2].mxu0 }
  0xfc   :  { %v179_v13 = vadd.f32 %v178_v24, %v1608_v18  ;;  %v180_v10 = vpop.f32.mrb[3].mxu0 }
  0xfd   :  { %v181_v9 = vadd.f32 %v180_v10, %v1610_v19 }
  0xfe   :  { %415 = vst [vmem:[#allocation2 + $0x18] sm:$0xff] %v179_v13  ;;  %v860_v21 = vpop.f32.mrb[0].mxu1 }
  0xff   :  { %416 = vst [vmem:[#allocation2 + $0x20] sm:$0xff] %v181_v9  ;;  %v184_v15 = vpop.f32.mrb[4].mxu0  ;;  %v339_v14 = vadd.f32 %v860_v21, %v1616_v17  ;;  %v333_v23 = vpop.f32.mrb[1].mxu1 }
 0x100   :  { %v185_v6 = vadd.f32 %v184_v15, %v1608_v18  ;;  %v186_v20 = vpop.f32.mrb[5].mxu0  ;;  %v334_v9 = vadd.f32 %v333_v23, %v1616_v17 }
 0x101   :  { %v187_v7 = vadd.f32 %v186_v20, %v1610_v19  ;;  %417 = vst [vmem:[#allocation2 + $0x28] sm:$0xff] %v339_v14 }
 0x102   :  { %418 = vst [vmem:[#allocation2 + $0x30] sm:$0xff] %v185_v6  ;;  %414 = vst [vmem:[#allocation2 + $0x10] sm:$0xff] %v334_v9  ;;  %v863_v25 = vpop.f32.mrb[2].mxu1 }
 0x103   :  { %419 = vst [vmem:[#allocation2 + $0x38] sm:$0xff] %v187_v7  ;;  %v190_v22 = vpop.f32.mrb[6].mxu0  ;;  %v349_v6 = vadd.f32 %v863_v25, %v1616_v17  ;;  %v343_v7 = vpop.f32.mrb[3].mxu1 }
 0x104   :  { %v191_v24 = vadd.f32 %v190_v22, %v1608_v18  ;;  %v192_v10 = vpop.f32.mrb[7].mxu0  ;;  %v344_v21 = vadd.f32 %v343_v7, %v1616_v17 }
 0x105   :  { %v193_v16 = vadd.f32 %v192_v10, %v1610_v19  ;;  %423 = vst [vmem:[#allocation2 + $0x58] sm:$0xff] %v349_v6 }
 0x106   :  { %421 = vst [vmem:[#allocation2 + $0x48] sm:$0xff] %v191_v24  ;;  %420 = vst [vmem:[#allocation2 + $0x40] sm:$0xff] %v344_v21  ;;  %v866_v23 = vpop.f32.mrb[4].mxu1 }
 0x107   :  { %422 = vst [vmem:[#allocation2 + $0x50] sm:$0xff] %v193_v16  ;;  %v196_v13 = vpop.f32.mrb[8].mxu0  ;;  %v359_v24 = vadd.f32 %v866_v23, %v1616_v17  ;;  %v353_v10 = vpop.f32.mrb[5].mxu1 }
 0x108   :  { %v197_v15 = vadd.f32 %v196_v13, %v1608_v18  ;;  %v198_v20 = vpop.f32.mrb[9].mxu0  ;;  %v354_v25 = vadd.f32 %v353_v10, %v1616_v17 }
 0x109   :  { %v199_v22 = vadd.f32 %v198_v20, %v1610_v19  ;;  %429 = vst [vmem:[#allocation2 + $0x88] sm:$0xff] %v359_v24 }
 0x10a   :  { %424 = vst [vmem:[#allocation2 + $0x60] sm:$0xff] %v197_v15  ;;  %426 = vst [vmem:[#allocation2 + $0x70] sm:$0xff] %v354_v25  ;;  %v869_v7 = vpop.f32.mrb[6].mxu1 }
 0x10b   :  { %425 = vst [vmem:[#allocation2 + $0x68] sm:$0xff] %v199_v22  ;;  %v202_v14 = vpop.f32.mrb[10].mxu0  ;;  %v369_v15 = vadd.f32 %v869_v7, %v1616_v17  ;;  %v363_v20 = vpop.f32.mrb[7].mxu1 }
 0x10c   :  { %v203_v9 = vadd.f32 %v202_v14, %v1608_v18  ;;  %v204_v16 = vpop.f32.mrb[11].mxu0  ;;  %v364_v23 = vadd.f32 %v363_v20, %v1616_v17 }
 0x10d   :  { %v205_v13 = vadd.f32 %v204_v16, %v1610_v19  ;;  %435 = vst [vmem:[#allocation2 + $0xb8] sm:$0xff] %v369_v15 }
 0x10e   :  { %427 = vst [vmem:[#allocation2 + $0x78] sm:$0xff] %v203_v9  ;;  %432 = vst [vmem:[#allocation2 + $0xa0] sm:$0xff] %v364_v23  ;;  %v872_v10 = vpop.f32.mrb[8].mxu1 }
 0x10f   :  { %428 = vst [vmem:[#allocation2 + $0x80] sm:$0xff] %v205_v13  ;;  %v208_v6 = vpop.f32.mrb[12].mxu0  ;;  %v379_v9 = vadd.f32 %v872_v10, %v1616_v17  ;;  %v373_v16 = vpop.f32.mrb[9].mxu1 }
 0x110   :  { %v209_v21 = vadd.f32 %v208_v6, %v1608_v18  ;;  %v210_v22 = vpop.f32.mrb[13].mxu0  ;;  %v374_v7 = vadd.f32 %v373_v16, %v1616_v17 }
 0x111   :  { %v211_v14 = vadd.f32 %v210_v22, %v1610_v19  ;;  %441 = vst [vmem:[#allocation2 + $0xe8] sm:$0xff] %v379_v9 }
 0x112   :  { %430 = vst [vmem:[#allocation2 + $0x90] sm:$0xff] %v209_v21  ;;  %438 = vst [vmem:[#allocation2 + $0xd0] sm:$0xff] %v374_v7  ;;  %v875_v20 = vpop.f32.mrb[10].mxu1 }
 0x113   :  { %431 = vst [vmem:[#allocation2 + $0x98] sm:$0xff] %v211_v14  ;;  %v214_v24 = vpop.f32.mrb[14].mxu0  ;;  %v389_v21 = vadd.f32 %v875_v20, %v1616_v17  ;;  %v383_v22 = vpop.f32.mrb[11].mxu1 }
 0x114   :  { %v215_v25 = vadd.f32 %v214_v24, %v1608_v18  ;;  %v216_v13 = vpop.f32.mrb[15].mxu0  ;;  %v384_v10 = vadd.f32 %v383_v22, %v1616_v17 }
 0x115   :  { %v217_v6 = vadd.f32 %v216_v13, %v1610_v19  ;;  %447 = vst [vmem:[#allocation2 + $0x118] sm:$0xff] %v389_v21 }
 0x116   :  { %433 = vst [vmem:[#allocation2 + $0xa8] sm:$0xff] %v215_v25  ;;  %444 = vst [vmem:[#allocation2 + $0x100] sm:$0xff] %v384_v10  ;;  %v878_v16 = vpop.f32.mrb[12].mxu1 }
 0x117   :  { %434 = vst [vmem:[#allocation2 + $0xb0] sm:$0xff] %v217_v6  ;;  %v220_v15 = vpop.f32.mrb[16].mxu0  ;;  %v399_v25 = vadd.f32 %v878_v16, %v1616_v17  ;;  %v393_v13 = vpop.f32.mrb[13].mxu1 }
 0x118   :  { %v221_v23 = vadd.f32 %v220_v15, %v1608_v18  ;;  %v222_v14 = vpop.f32.mrb[17].mxu0  ;;  %v394_v20 = vadd.f32 %v393_v13, %v1616_v17 }
 0x119   :  { %v223_v24 = vadd.f32 %v222_v14, %v1610_v19  ;;  %453 = vst [vmem:[#allocation2 + $0x148] sm:$0xff] %v399_v25 }
 0x11a   :  { %436 = vst [vmem:[#allocation2 + $0xc0] sm:$0xff] %v221_v23  ;;  %450 = vst [vmem:[#allocation2 + $0x130] sm:$0xff] %v394_v20  ;;  %v881_v22 = vpop.f32.mrb[14].mxu1 }
 0x11b   :  { %437 = vst [vmem:[#allocation2 + $0xc8] sm:$0xff] %v223_v24  ;;  %v226_v9 = vpop.f32.mrb[18].mxu0  ;;  %v409_v23 = vadd.f32 %v881_v22, %v1616_v17  ;;  %v403_v14 = vpop.f32.mrb[15].mxu1 }
 0x11c   :  { %v227_v7 = vadd.f32 %v226_v9, %v1608_v18  ;;  %v228_v6 = vpop.f32.mrb[19].mxu0  ;;  %v404_v16 = vadd.f32 %v403_v14, %v1616_v17 }
 0x11d   :  { %v229_v15 = vadd.f32 %v228_v6, %v1610_v19  ;;  %459 = vst [vmem:[#allocation2 + $0x178] sm:$0xff] %v409_v23 }
 0x11e   :  { %439 = vst [vmem:[#allocation2 + $0xd8] sm:$0xff] %v227_v7  ;;  %456 = vst [vmem:[#allocation2 + $0x160] sm:$0xff] %v404_v16 }
 0x11f   :  { %440 = vst [vmem:[#allocation2 + $0xe0] sm:$0xff] %v229_v15  ;;  %v232_v21 = vpop.f32.mrb[20].mxu0 }
 0x120   :  { %v233_v10 = vadd.f32 %v232_v21, %v1608_v18  ;;  %v234_v24 = vpop.f32.mrb[21].mxu0 }
 0x121   :  { %v235_v9 = vadd.f32 %v234_v24, %v1610_v19 }
 0x122   :  { %442 = vst [vmem:[#allocation2 + $0xf0] sm:$0xff] %v233_v10 }
 0x123   :  { %443 = vst [vmem:[#allocation2 + $0xf8] sm:$0xff] %v235_v9  ;;  %v238_v25 = vpop.f32.mrb[22].mxu0 }
 0x124   :  { %v239_v13 = vadd.f32 %v238_v25, %v1608_v18  ;;  %v240_v7 = vpop.f32.mrb[23].mxu0 }
 0x125   :  { %v241_v6 = vadd.f32 %v240_v7, %v1610_v19 }
 0x126   :  { %445 = vst [vmem:[#allocation2 + $0x108] sm:$0xff] %v239_v13 }
 0x127   :  { %446 = vst [vmem:[#allocation2 + $0x110] sm:$0xff] %v241_v6  ;;  %v244_v20 = vpop.f32.mrb[24].mxu0 }
 0x128   :  { %v245_v15 = vadd.f32 %v244_v20, %v1608_v18  ;;  %v246_v22 = vpop.f32.mrb[25].mxu0 }
 0x129   :  { %v247_v17 = vadd.f32 %v246_v22, %v1610_v19 }
 0x12a   :  { %448 = vst [vmem:[#allocation2 + $0x120] sm:$0xff] %v245_v15 }
 0x12b   :  { %449 = vst [vmem:[#allocation2 + $0x128] sm:$0xff] %v247_v17  ;;  %v250_v21 = vpop.f32.mrb[26].mxu0 }
 0x12c   :  { %v251_v23 = vadd.f32 %v250_v21, %v1608_v18  ;;  %v252_v14 = vpop.f32.mrb[27].mxu0 }
 0x12d   :  { %v253_v10 = vadd.f32 %v252_v14, %v1610_v19 }
 0x12e   :  { %451 = vst [vmem:[#allocation2 + $0x138] sm:$0xff] %v251_v23 }
 0x12f   :  { %452 = vst [vmem:[#allocation2 + $0x140] sm:$0xff] %v253_v10  ;;  %v256_v24 = vpop.f32.mrb[28].mxu0 }
 0x130   :  { %v257_v16 = vadd.f32 %v256_v24, %v1608_v18  ;;  %v258_v9 = vpop.f32.mrb[29].mxu0 }
 0x131   :  { %v259_v25 = vadd.f32 %v258_v9, %v1610_v19  ;;  %765 = sbr.rel (%p769_p0) target bundleno = 617 (0x269), region = 46 }
 0x132   :  { %454 = vst [vmem:[#allocation2 + $0x150] sm:$0xff] %v257_v16 }
 0x133   :  { %455 = vst [vmem:[#allocation2 + $0x158] sm:$0xff] %v259_v25  ;;  %v262_v13 = vpop.f32.mrb[30].mxu0 }
 0x134   :  { %v263_v7 = vadd.f32 %v262_v13, %v1608_v18  ;;  %v264_v6 = vpop.f32.mrb[31].mxu0 }
 0x135   :  { %v265_v20 = vadd.f32 %v264_v6, %v1610_v19 }
 0x136   :  { %457 = vst [vmem:[#allocation2 + $0x168] sm:$0xff] %v263_v7 }
 0x137   :  { %458 = vst [vmem:[#allocation2 + $0x170] sm:$0xff] %v265_v20 }
 0x138 LB: > { %v981_v18 = vpack.c.bf16 %v1373_v29, %v1358_v27  ;;  %v1783_v3 = vld [vmem:[#allocation6_spill] sm:$0xff]  ;;  %v985_v15 = vpack.c.bf16 %v1403_v35, %v1388_v32  ;;  %v1676_v22 = vld [vmem:[#allocation3] sm:$0xff]  ;;  %v987_v17 = vpack.c.bf16 %v1398_v34, %v1383_v31  ;;  %v1013_v21 = vpack.c.bf16 %v1378_v30, %v1363_v28  ;;  %s1684_s18 = sadd.s32 1, %s1083_s6   ;;  %v1785_v0 = vld [vmem:[#allocation7_spill] sm:$0xff]  ;;  %s775_s19 = smul.u32 48, %s1083_s6  ;;  %s1083_s6 = sphi %s1665_s6, %s1793_s6  }
 0x139   : > { %v983_v19 = vpack.c.bf16 %v1783_v3, %v1353_v26  ;;  %914 = vmatprep.mubr.f32.mxu1 %v1676_v22  ;;  %v989_v23 = vpack.c.bf16 %v1433_v41, %v1418_v38  ;;  %v1017_v14 = vpack.c.bf16 %v1408_v36, %v1393_v33  ;;  %v1086_v10 = vmov 0.0   ;;  %v1784_v1 = vld [vmem:[#allocation8_spill] sm:$0xff]  ;;  %v1786_v2 = vld [vmem:[#allocation9_spill] sm:$0xff]  ;;  %v1787_v5 = vld [vmem:[#allocation11_spill] sm:$0xff]  ;;  %p524_p1 = scmp.ge.s32.totalorder %s1684_s18, %s1764_s0  ;;  %s1793_s6 = smov %s1684_s18 }
 0x13a   : > { %982 = vmatprep.subr.bf16.mxu0 %v981_v18  ;;  %1014 = vmatprep.subr.bf16.mxu1 %v1013_v21  ;;  %v991_v24 = vpack.c.bf16 %v1428_v40, %v1413_v37  ;;  %v1087_v16 = vmov 0   ;;  %v738_v9 = vstv %s1684_s18  ;;  %v1021_v25 = vpack.c.bf16 %v1438_v42, %v1423_v39  ;;  %v1788_v4 = vld [vmem:[#allocation10_spill] sm:$0xff]  ;;  %s1733_s20 = scalar_lea.vmem [#allocation2], %s775_s19 }
 0x13b   : > { %984 = vmatpush1.bf16.msra.mxu0 %v983_v19  ;;  %603 = vmatprep.mubr.f32.mxu0 %v1086_v10  ;;  %vm739_vm0 = vcmp.eq.s32.totalorder %v1598_v11, %v738_v9  ;;  %vm740_vm1 = vcmp.eq.s32.totalorder %v1603_v12, %v738_v9  ;;  %v993_v13 = vpack.c.bf16 %v1463_v47, %v1448_v44 }
 0x13c   : > { %986 = vmatprep.subr.bf16.mxu0 %v985_v15  ;;  %1016 = vmatpush3.bf16.msra.mxu1 %v1013_v21  ;;  %v743_v7 = vsel %vm739_vm0, 1, %v1087_v16  ;;  %v744_v6 = vsel %vm740_vm1, 1, %v1087_v16  ;;  %v995_v20 = vpack.c.bf16 %v1458_v46, %v1443_v43  ;;  %v1025_v18 = vpack.c.bf16 %v1468_v48, %v1453_v45 }
 0x13d   : > { %1056 = vset.pattern.permute.xlu0 %v1087_v16  ;;  %1018 = vmatprep.subr.bf16.mxu1 %v1017_v14  ;;  %v997_v19 = vpack.c.bf16 %v1493_v53, %v1478_v50  ;;  %v999_v15 = vpack.c.bf16 %v1488_v52, %v1473_v49  ;;  %v1001_v21 = vpack.c.bf16 %v1523_v59, %v1508_v56 }
 0x13e   : > { %746 = vperm.xlu0 %1056, %v743_v7   ;;  %v1007_v16 = vpack.c.bf16 %v1785_v0, %v1533_v61  ;;  %v1037_v9 = vpack.c.bf16 %v1786_v2, %v1543_v63 }
 0x13f   : > { %988 = vmatpush1.bf16.msra.mxu0 %v987_v17  ;;  %v1029_v17 = vpack.c.bf16 %v1498_v54, %v1483_v51 }
 0x140   : > { %990 = vmatprep.subr.bf16.mxu0 %v989_v23  ;;  %1020 = vmatpush3.bf16.msra.mxu1 %v1017_v14  ;;  %v1003_v23 = vpack.c.bf16 %v1518_v58, %v1503_v55  ;;  %v1033_v14 = vpack.c.bf16 %v1528_v60, %v1513_v57 }
 0x141   : > { %1022 = vmatprep.subr.bf16.mxu1 %v1021_v25 }
 0x142   : > { %749 = vperm.xlu0 %1056, %v744_v6   ;;  %v1790_v6 = vld [vmem:[#allocation12_spill] sm:$0xff] }
 0x143   : > { %992 = vmatpush1.bf16.msra.mxu0 %v991_v24  ;;  %v1005_v24 = vpack.c.bf16 %v1784_v1, %v1538_v62 }
 0x144   : > { %994 = vmatprep.subr.bf16.mxu0 %v993_v13  ;;  %1024 = vmatpush3.bf16.msra.mxu1 %v1021_v25  ;;  %v1009_v25 = vpack.c.bf16 %v1583_v8, %v1787_v5  ;;  %v1789_v13 = vld [vmem:[#allocation13_spill] sm:$0xff] }
 0x145   : > { %1026 = vmatprep.subr.bf16.mxu1 %v1025_v18  ;;  %v1011_v7 = vpack.c.bf16 %v1789_v13, %v1788_v4 }
 0x147   : > { %996 = vmatpush1.bf16.msra.mxu0 %v995_v20  ;;  %v1791_v20 = vld [vmem:[#allocation14_spill] sm:$0xff] }
 0x148   : > { %998 = vmatprep.subr.bf16.mxu0 %v997_v19  ;;  %1028 = vmatpush3.bf16.msra.mxu1 %v1025_v18  ;;  %v1041_v18 = vpack.c.bf16 %v1791_v20, %v1790_v6  ;;  %v1728_v19 = vld [vmem:[#allocation3 + $0x8] sm:$0xff] }
 0x149   : > { %1030 = vmatprep.subr.bf16.mxu1 %v1029_v17 }
 0x14b   : > { %1000 = vmatpush1.bf16.msra.mxu0 %v999_v15  ;;  %v533_v15 = vld [vmem:[%s1733_s20] sm:$0xff] }
 0x14c   : > { %1002 = vmatprep.subr.bf16.mxu0 %v1001_v21  ;;  %1032 = vmatpush3.bf16.msra.mxu1 %v1029_v17  ;;  %v534_v17 = vld [vmem:[%s1733_s20 + $0x8] sm:$0xff] }
 0x14d   : > { %1034 = vmatprep.subr.bf16.mxu1 %v1033_v14 }
 0x14f   : > { %1004 = vmatpush1.bf16.msra.mxu0 %v1003_v23 }
 0x150   : > { %1006 = vmatprep.subr.bf16.mxu0 %v1005_v24  ;;  %1036 = vmatpush3.bf16.msra.mxu1 %v1033_v14 }
 0x151   : > { %1038 = vmatprep.subr.bf16.mxu1 %v1037_v9 }
 0x153   : > { %1008 = vmatpush1.bf16.msra.mxu0 %v1007_v16 }
 0x154   : > { %1010 = vmatprep.subr.bf16.mxu0 %v1009_v25  ;;  %1040 = vmatpush3.bf16.msra.mxu1 %v1037_v9  ;;  %v537_v9 = vld [vmem:[%s1733_s20 + $0x20] sm:$0xff] }
 0x155   : > { %1042 = vmatprep.subr.bf16.mxu1 %v1041_v18 }
 0x157   : > { %1012 = vmatpush1.bf16.msra.mxu0 %v1011_v7 }
 0x158   : > { %1044 = vmatpush3.bf16.msra.mxu1 %v1041_v18 }
 0x15a   : > { %604 = vmatmul.mubr.f32.vlgmr.msra.gmra.mrb[0].mxu0 %v1676_v22 }
 0x15b   : > { %609 = vmatprep.mubr.f32.mxu0 %v1086_v10  ;;  %915 = vmatmul.mubr.f32.vlgmr.msra.gmra.mrb[0].mxu1 %v1728_v19  ;;  %v536_v10 = vld [vmem:[%s1733_s20 + $0x18] sm:$0xff] }
 0x15e   : > { %610 = vmatmul.mubr.f32.gmra.mrb[2].mxu0 %v1728_v19 }
 0x22d   : > { %v605_v21 = vpop.f32.mrb[0].mxu0 }
 0x22e   : > { %v691_v23 = vadd.f32 %v605_v21, %v533_v15  ;;  %v607_v14 = vpop.f32.mrb[1].mxu0  ;;  %v916_v25 = vpop.f32.mrb[0].mxu1 }
 0x22f   : > { %v705_v24 = vadd.f32 %v607_v14, %v534_v17  ;;  %v682_v7 = vpop.f32.mrb[1].mxu1 }
 0x230   : > { %v771_v16 = vmul.f32 -1.442695, %v691_v23 }
 0x231   : > { %v611_v13 = vpop.f32.mrb[2].mxu0  ;;  %v773_v1 = vmul.f32 -1.442695, %v705_v24  ;;  %v535_v24 = vld [vmem:[%s1733_s20 + $0x10] sm:$0xff] }
 0x232   : > { %1057 = vpow2.f32 %v771_v16  ;;  %v692_v6 = vadd.f32 %v611_v13, %v536_v10  ;;  %v613_v20 = vpop.f32.mrb[3].mxu0  ;;  %v1792_v10 = vld [vmem:[#allocation15_spill] sm:$0xff] }
 0x233   : > { %v706_v18 = vadd.f32 %v613_v20, %v537_v9  ;;  %v719_v13 = vadd.f32 %v1792_v10, %v682_v7 }
 0x234   : > { %v772_v0 = vmul.f32 -1.442695, %v692_v6 }
 0x235   : > { %v774_v2 = vmul.f32 -1.442695, %v706_v18 }
 0x236   : > { %1059 = vpow2.f32 %v772_v0  ;;  %v720_v0 = vadd.f32 %v916_v25, %v1792_v10  ;;  %v741_v25 = vld [vmem:[%s1766_s7] sm:$0xff] }
 0x237   : > { %1061 = vpow2.f32 %v773_v1 }
 0x238   : > { %1063 = vpow2.f32 %v774_v2 }
 0x23c   : > { %v1058_v3 = vpop.eup %1057 }
 0x23d   : > { %v699_v15 = vadd.f32 1.0, %v1058_v3  ;;  %v538_v3 = vld [vmem:[%s1733_s20 + $0x28] sm:$0xff] }
 0x23f   : > { %1065 = vrcp.f32 %v699_v15 }
 0x240   : > { %v1060_v17 = vpop.eup %1059 }
 0x241   : > { %v700_v21 = vadd.f32 1.0, %v1060_v17  ;;  %v1062_v23 = vpop.eup %1061 }
 0x242   : > { %v1064_v14 = vpop.eup %1063  ;;  %v713_v16 = vadd.f32 1.0, %v1062_v23  ;;  %v747_v23 = vpop.permute.xlu0 %746 }
 0x243   : > { %1067 = vrcp.f32 %v700_v21  ;;  %v714_v6 = vadd.f32 1.0, %v1064_v14  ;;  %vm751_vm2 = vcmp.eq.s32.totalorder %v747_v23, 1 }
 0x244   : > { %1069 = vrcp.f32 %v713_v16 }
 0x245   : > { %1071 = vrcp.f32 %v714_v6 }
 0x249   : > { %v1066_v9 = vpop.eup %1065 }
 0x24a   : > { %v721_v1 = vmul.f32 %v1066_v9, %v719_v13 }
 0x24c   : > { %v723_v20 = vadd.f32 %v721_v1, %v535_v24  ;;  %v750_v24 = vpop.permute.xlu0 %749 }
 0x24d   : > { %v1068_v2 = vpop.eup %1067  ;;  %vm752_vm3 = vcmp.eq.s32.totalorder %v750_v24, 1 }
 0x24e   : > { %v722_v18 = vmul.f32 %v1068_v2, %v720_v0  ;;  %1073 = vtanh.f32 %v723_v20  ;;  %v1070_v17 = vpop.eup %1069 }
 0x24f   : > { %v1072_v21 = vpop.eup %1071  ;;  %v727_v4 = vsub.f32 1.0, %v1070_v17  ;;  %v731_v14 = vmul.f32 %v1070_v17, %v1676_v22 }
 0x250   : > { %v724_v15 = vadd.f32 %v722_v18, %v538_v3  ;;  %v728_v13 = vsub.f32 1.0, %v1072_v21  ;;  %v732_v1 = vmul.f32 %v1072_v21, %v1728_v19 }
 0x252   : > { %1075 = vtanh.f32 %v724_v15 }
 0x258   : > { %v1074_v7 = vpop.eup %1073 }
 0x259   : > { %v729_v5 = vmul.f32 %v1074_v7, %v727_v4  ;;  %v742_v4 = vld [vmem:[%s1766_s7 + $0x8] sm:$0xff] }
 0x25b   : > { %v733_v16 = vadd.f32 %v731_v14, %v729_v5 }
 0x25c   : > { %v1076_v9 = vpop.eup %1075 }
 0x25d   : > { %735 = vst [vmem:[#allocation3] sm:$0xff] %v733_v16  ;;  %v753_v6 = vsel %vm751_vm2, %v733_v16, %v741_v25  ;;  %v730_v0 = vmul.f32 %v1076_v9, %v728_v13 }
 0x25e   : > { %755 = vst [vmem:[%s1766_s7] sm:$0xff] %v753_v6 }
 0x25f   : > { %v734_v22 = vadd.f32 %v732_v1, %v730_v0 }
 0x261   : > { %736 = vst [vmem:[#allocation3 + $0x8] sm:$0xff] %v734_v22  ;;  %v754_v5 = vsel %vm752_vm3, %v734_v22, %v742_v4 }
 0x262   : > { %756 = vst [vmem:[%s1766_s7 + $0x8] sm:$0xff] %v754_v5  ;;  %527 = sbr.rel (!%p524_p1) target bundleno = 312 (0x138), region = 52 }
 0x269 PF:  {}

</bundles_post_ra>
